<compile_context>
chip_gen: v7x
topology: tpu7x:2x2x1
jax: 0.10.0
libtpu: 0.0.40
codegen_flags: <defaults>
</compile_context>

<pallas_src>
import functools

import jax
import jax.numpy as jnp
from jax.experimental import pallas as pl
from jax.experimental.pallas import tpu as pltpu


# ---------------------------------------------------------------------------
# Kernel
# ---------------------------------------------------------------------------
def _actor_kernel(limits_ref,                       # SMEM (2,) f32: [limit_v, limit_w]
                  x_ref,                            # (TILE_B, S_p)  f32
                  w1_ref, b1_ref,                   # (S_p, H_p) cd, (1, H_p) f32
                  w2_ref, b2_ref,                   # (H_p, H_p) cd, (1, H_p) f32
                  w3_ref, b3_ref,                   # (H_p, A_p) cd, (1, A_p) f32
                  o_ref):                           # (TILE_B, A_out) f32
    limit_v = limits_ref[0]
    limit_w = limits_ref[1]
    cd = w1_ref.dtype

    x = x_ref[...].astype(cd)
    # layer 1: (B, S) @ (S, H) + (1, H) -> relu   (f32 accumulation on MXU)
    h1 = jnp.dot(x, w1_ref[...], preferred_element_type=jnp.float32) + b1_ref[...]
    h1 = jnp.maximum(h1, 0.0).astype(cd)
    # layer 2: (B, H) @ (H, H) + (1, H) -> relu
    h2 = jnp.dot(h1, w2_ref[...], preferred_element_type=jnp.float32) + b2_ref[...]
    h2 = jnp.maximum(h2, 0.0).astype(cd)
    # layer 3: (B, H) @ (H, A) + (1, A)
    a = jnp.dot(h2, w3_ref[...], preferred_element_type=jnp.float32) + b3_ref[...]

    # Keep only the real action columns, then squash col 0 (sigmoid*limit_v)
    # and col 1 (tanh*limit_w) with ONE tanh pass: sigmoid(x) = 0.5*(tanh(x/2)+1).
    # Columns >= 2 (if any) pass through raw `a`, matching the module.
    a = a[:, :o_ref.shape[1]]
    col = jax.lax.broadcasted_iota(jnp.int32, a.shape, dimension=1)
    t = jnp.tanh(jnp.where(col == 0, 0.5 * a, a))
    o_ref[...] = jnp.where(
        col == 0, (t + 1.0) * (0.5 * limit_v),
        jnp.where(col == 1, t * limit_w, a)).astype(o_ref.dtype)


# ---------------------------------------------------------------------------
# Wrapper
# ---------------------------------------------------------------------------
def _round_up(x, m):
    return (x + m - 1) // m * m


_MAX_TILE_B = 1024


def _pick_tile_b(B):
    """Batch tile.

    * B <= 256: a single tile (work is tiny; splitting only adds per-step
      overhead).
    * B  > 256: split into n = max(2, cdiv(B, 1024)) near-equal tiles so that
      (a) the "parallel" batch axis has >= 2 steps for v7x's two TensorCores
      and (b) batch padding never exceeds ~one sublane row per tile.
    Tiles are multiples of 8 (f32 sublane).
    """
    if B <= 256:
        return _round_up(max(B, 8), 8)
    n_tiles = max(2, pl.cdiv(B, _MAX_TILE_B))
    return _round_up(pl.cdiv(B, n_tiles), 8)


def pad_actor_params(params, compute_dtype=jnp.bfloat16):
    """Pad once (at init time) to TPU-friendly shapes; reuse across calls.

    Weights are stored (in_features, out_features) so the kernel computes
    y = x @ W + b.  Hidden/action dims are padded to 128 lanes; the state dim
    (K of layer 1) only to the compute dtype's sublane multiple.  Zero padding
    is exact AND required: padded rows/cols of W and b must be zero so padded
    lanes contribute nothing downstream (relu(0)=0, 0-rows add 0).
    bf16 weights (default) are MXU-native on v5e/v6e/v7x; biases and
    accumulation stay f32.
    """
    w1, b1, w2, b2, w3, b3 = params
    S, H = w1.shape
    A = w3.shape[1]
    cd, f32 = jnp.dtype(compute_dtype), jnp.float32
    sub = 32 // cd.itemsize                       # 8 for f32, 16 for bf16
    S_p = _round_up(S, sub)
    H_p = _round_up(max(H, 128), 128)
    A_p = _round_up(max(A, 128), 128)

    w1_p = jnp.zeros((S_p, H_p), cd).at[:S, :H].set(w1.astype(cd))
    b1_p = jnp.zeros((1, H_p), f32).at[0, :H].set(b1.astype(f32))
    w2_p = jnp.zeros((H_p, H_p), cd).at[:H, :H].set(w2.astype(cd))
    b2_p = jnp.zeros((1, H_p), f32).at[0, :H].set(b2.astype(f32))
    w3_p = jnp.zeros((H_p, A_p), cd).at[:H, :A].set(w3.astype(cd))
    b3_p = jnp.zeros((1, A_p), f32).at[0, :A].set(b3.astype(f32))
    return (w1_p, b1_p, w2_p, b2_p, w3_p, b3_p)


@functools.partial(jax.jit, static_argnames=("action_dim",))
def actor_forward(state, padded_params, limits, *, action_dim):
    """state: (batch, state_dim) or (state_dim,); limits: (2,) f32 [v, w]."""
    w1_p, b1_p, w2_p, b2_p, w3_p, b3_p = padded_params
    squeeze = state.ndim == 1
    if squeeze:
        state = state[None, :]
    state = state.astype(jnp.float32)

    B, S = state.shape
    S_p, H_p = w1_p.shape
    A_p = w3_p.shape[1]
    cd = w1_p.dtype

    TILE_B = _pick_tile_b(B)
    B_p = _round_up(B, TILE_B)
    grid = (B_p // TILE_B,)

    # Pad only when actually needed (a few batch rows and/or state columns up
    # to the sublane multiple); skipped entirely when shapes already line up.
    if B_p != B or S_p != S:
        x_p = jnp.pad(state, ((0, B_p - B), (0, S_p - S)))
    else:
        x_p = state
    limits = jnp.asarray(limits, jnp.float32).reshape((2,))

    w_itemsize = jnp.dtype(cd).itemsize
    flops = 2 * B_p * (S_p * H_p + H_p * H_p + H_p * A_p)
    bytes_accessed = (B_p * S_p * 4                                       # x (f32)
                      + (S_p * H_p + H_p * H_p + H_p * A_p) * w_itemsize  # weights
                      + (2 * H_p + A_p) * 4                               # biases
                      + B_p * action_dim * 4)                             # output

    out_p = pl.pallas_call(
        _actor_kernel,
        out_shape=jax.ShapeDtypeStruct((B_p, action_dim), jnp.float32),
        grid=grid,
        in_specs=[
            pl.BlockSpec(memory_space=pltpu.SMEM),                 # limits (scalars)
            pl.BlockSpec((TILE_B, S_p), lambda i: (i, 0)),         # x tile (pipelined)
            pl.BlockSpec((S_p, H_p), lambda i: (0, 0)),            # w1 (VMEM-resident)
            pl.BlockSpec((1, H_p), lambda i: (0, 0)),              # b1
            pl.BlockSpec((H_p, H_p), lambda i: (0, 0)),            # w2
            pl.BlockSpec((1, H_p), lambda i: (0, 0)),              # b2
            pl.BlockSpec((H_p, A_p), lambda i: (0, 0)),            # w3
            pl.BlockSpec((1, A_p), lambda i: (0, 0)),              # b3
        ],
        out_specs=pl.BlockSpec((TILE_B, action_dim), lambda i: (i, 0)),
        compiler_params=pltpu.CompilerParams(
            dimension_semantics=("parallel",)),                    # 2 TCs on v7x
        cost_estimate=pl.CostEstimate(
            flops=flops,
            transcendentals=B_p * action_dim,
            bytes_accessed=bytes_accessed),
    )(limits, x_p, w1_p, b1_p, w2_p, b2_p, w3_p, b3_p)

    out = out_p[:B] if B_p != B else out_p
    if squeeze:
        out = out[0]
    return out


# ---------------------------------------------------------------------------
# Params / reference
# ---------------------------------------------------------------------------
def init_actor_params(key, state_dim, action_dim, hidden=250):
    """xavier-uniform weights, biases = 0.01 (matches the PyTorch __init__)."""
    def xavier(k, fan_in, fan_out):
        bound = (6.0 / (fan_in + fan_out)) ** 0.5
        return jax.random.uniform(k, (fan_in, fan_out), jnp.float32,
                                  minval=-bound, maxval=bound)
    k1, k2, k3 = jax.random.split(key, 3)
    w1 = xavier(k1, state_dim, hidden)
    b1 = jnp.full((hidden,), 0.01, jnp.float32)
    w2 = xavier(k2, hidden, hidden)
    b2 = jnp.full((hidden,), 0.01, jnp.float32)
    w3 = xavier(k3, hidden, action_dim)
    b3 = jnp.full((action_dim,), 0.01, jnp.float32)
    return (w1, b1, w2, b2, w3, b3)


def _reference_forward(state, params, action_limit_v, action_limit_w):
    """Pure-JAX f32 reference for correctness checking."""
    w1, b1, w2, b2, w3, b3 = params
    x = state if state.ndim == 2 else state[None, :]
    h1 = jnp.maximum(x @ w1 + b1, 0.0)
    h2 = jnp.maximum(h1 @ w2 + b2, 0.0)
    a = h2 @ w3 + b3
    a = a.at[:, 0].set(jax.nn.sigmoid(a[:, 0]) * action_limit_v)
    a = a.at[:, 1].set(jnp.tanh(a[:, 1]) * action_limit_w)
    return a if state.ndim == 2 else a[0]


# ---------------------------------------------------------------------------
# Self-test
# ---------------------------------------------------------------------------
if __name__ == "__main__":
    state_dim, action_dim = 16, 2
    action_limit_v, action_limit_w = 0.22, 2.0
    limits = jnp.array([action_limit_v, action_limit_w], jnp.float32)

    key = jax.random.PRNGKey(0)
    k_params, k_state, k_state_big = jax.random.split(key, 3)
    params = init_actor_params(k_params, state_dim, action_dim)

    # Pad once, reuse across calls (no per-call weight padding).
    padded_f32 = pad_actor_params(params, jnp.float32)   # exact-precision path
    padded_bf16 = pad_actor_params(params)               # default: bf16 weights

    # Small batch (exact f32 semantics).
    state = jax.random.normal(k_state, (2, state_dim), jnp.float32)
    out = jax.block_until_ready(
        actor_forward(state, padded_f32, limits, action_dim=action_dim))
    ref = _reference_forward(state, params, action_limit_v, action_limit_w)
    assert out.shape == (2, action_dim), out.shape
    assert jnp.allclose(out, ref, atol=1e-5, rtol=1e-5), (out, ref)

    # Single (1-D) state path, like the module's non-batched branch.
    out1 = jax.block_until_ready(
        actor_forward(state[0], padded_f32, limits, action_dim=action_dim))
    ref1 = _reference_forward(state[0], params, action_limit_v, action_limit_w)
    assert out1.shape == (action_dim,), out1.shape
    assert jnp.allclose(out1, ref1, atol=1e-5, rtol=1e-5), (out1, ref1)

    # Larger batch: exercises the >=2-tile batch grid with resident weights.
    state_big = jax.random.normal(k_state_big, (300, state_dim), jnp.float32)
    out_big = jax.block_until_ready(
        actor_forward(state_big, padded_f32, limits, action_dim=action_dim))
    ref_big = _reference_forward(state_big, params, action_limit_v, action_limit_w)
    assert out_big.shape == (300, action_dim), out_big.shape
    assert jnp.allclose(out_big, ref_big, atol=1e-4, rtol=1e-4)

    # bf16 default path (MXU-native operands, f32 accumulation); loose tol
    # because the state is also cast to bf16 before layer 1.
    out_bf16 = jax.block_until_ready(
        actor_forward(state_big, padded_bf16, limits, action_dim=action_dim))
    assert out_bf16.shape == (300, action_dim)
    assert jnp.allclose(out_bf16, ref_big, atol=1e-1, rtol=1e-1)

    print("KERNEL_OK")
</pallas_src>

<mosaic_0001>
module attributes {stable_mosaic.version = 11 : i64} {
  func.func @_actor_kernel(%arg0: i32, %arg1: memref<2xf32, #tpu.memory_space<smem>>, %arg2: memref<8x16xf32, #tpu.memory_space<vmem>>, %arg3: memref<16x256xf32, #tpu.memory_space<vmem>>, %arg4: memref<1x256xf32, #tpu.memory_space<vmem>>, %arg5: memref<256x256xf32, #tpu.memory_space<vmem>>, %arg6: memref<1x256xf32, #tpu.memory_space<vmem>>, %arg7: memref<256x128xf32, #tpu.memory_space<vmem>>, %arg8: memref<1x128xf32, #tpu.memory_space<vmem>>, %arg9: memref<8x2xf32, #tpu.memory_space<vmem>>) attributes {dimension_semantics = [#tpu.dimension_semantics<parallel>], iteration_bounds = array<i64: 1>, scalar_prefetch = 0 : i64, scratch_operands = 0 : i64, tpu.core_type = #tpu.core_type<tc>, window_params = [{transform_indices = @transform_0, window_bounds = array<i64: 2>}, {transform_indices = @transform_1, window_bounds = array<i64: 8, 16>}, {pipeline_mode = #tpu.pipeline_mode<synchronous>, transform_indices = @transform_2, window_bounds = array<i64: 16, 256>}, {pipeline_mode = #tpu.pipeline_mode<synchronous>, transform_indices = @transform_3, window_bounds = array<i64: 1, 256>}, {pipeline_mode = #tpu.pipeline_mode<synchronous>, transform_indices = @transform_4, window_bounds = array<i64: 256, 256>}, {pipeline_mode = #tpu.pipeline_mode<synchronous>, transform_indices = @transform_5, window_bounds = array<i64: 1, 256>}, {pipeline_mode = #tpu.pipeline_mode<synchronous>, transform_indices = @transform_6, window_bounds = array<i64: 256, 128>}, {pipeline_mode = #tpu.pipeline_mode<synchronous>, transform_indices = @transform_7, window_bounds = array<i64: 1, 128>}, {transform_indices = @transform_8, window_bounds = array<i64: 8, 2>}]} {
    %c0 = arith.constant 0 : index
    %0 = memref.load %arg1[%c0] : memref<2xf32, #tpu.memory_space<smem>>
    %c1 = arith.constant 1 : index
    %1 = memref.load %arg1[%c1] : memref<2xf32, #tpu.memory_space<smem>>
    %c0_0 = arith.constant 0 : index
    %c0_1 = arith.constant 0 : index
    %2 = vector.load %arg2[%c0_0, %c0_1] : memref<8x16xf32, #tpu.memory_space<vmem>>, vector<8x16xf32>
    %c0_2 = arith.constant 0 : index
    %c0_3 = arith.constant 0 : index
    %3 = vector.load %arg3[%c0_2, %c0_3] : memref<16x256xf32, #tpu.memory_space<vmem>>, vector<16x256xf32>
    %cst = arith.constant dense<0.000000e+00> : vector<8x256xf32>
    %4 = tpu.matmul %2, %3, %cst {dimension_numbers = #tpu.dot_dimension_numbers<[1], [0], [0], [1], [0, 0, 1, 1], [], []>} : vector<8x16xf32>, vector<16x256xf32>, vector<8x256xf32> -> vector<8x256xf32>
    %c0_4 = arith.constant 0 : index
    %c0_5 = arith.constant 0 : index
    %5 = vector.load %arg4[%c0_4, %c0_5] : memref<1x256xf32, #tpu.memory_space<vmem>>, vector<1x256xf32>
    %6 = vector.broadcast %5 : vector<1x256xf32> to vector<8x256xf32>
    %7 = arith.addf %4, %6 : vector<8x256xf32>
    %cst_6 = arith.constant 0.000000e+00 : f32
    %8 = vector.broadcast %cst_6 : f32 to vector<8x256xf32>
    %9 = arith.maximumf %7, %8 : vector<8x256xf32>
    %c0_7 = arith.constant 0 : index
    %c0_8 = arith.constant 0 : index
    %10 = vector.load %arg5[%c0_7, %c0_8] : memref<256x256xf32, #tpu.memory_space<vmem>>, vector<256x256xf32>
    %cst_9 = arith.constant dense<0.000000e+00> : vector<8x256xf32>
    %11 = tpu.matmul %9, %10, %cst_9 {dimension_numbers = #tpu.dot_dimension_numbers<[1], [0], [0], [1], [0, 0, 1, 1], [], []>} : vector<8x256xf32>, vector<256x256xf32>, vector<8x256xf32> -> vector<8x256xf32>
    %c0_10 = arith.constant 0 : index
    %c0_11 = arith.constant 0 : index
    %12 = vector.load %arg6[%c0_10, %c0_11] : memref<1x256xf32, #tpu.memory_space<vmem>>, vector<1x256xf32>
    %13 = vector.broadcast %12 : vector<1x256xf32> to vector<8x256xf32>
    %14 = arith.addf %11, %13 : vector<8x256xf32>
    %cst_12 = arith.constant 0.000000e+00 : f32
    %15 = vector.broadcast %cst_12 : f32 to vector<8x256xf32>
    %16 = arith.maximumf %14, %15 : vector<8x256xf32>
    %c0_13 = arith.constant 0 : index
    %c0_14 = arith.constant 0 : index
    %17 = vector.load %arg7[%c0_13, %c0_14] : memref<256x128xf32, #tpu.memory_space<vmem>>, vector<256x128xf32>
    %cst_15 = arith.constant dense<0.000000e+00> : vector<8x128xf32>
    %18 = tpu.matmul %16, %17, %cst_15 {dimension_numbers = #tpu.dot_dimension_numbers<[1], [0], [0], [1], [0, 0, 1, 1], [], []>} : vector<8x256xf32>, vector<256x128xf32>, vector<8x128xf32> -> vector<8x128xf32>
    %c0_16 = arith.constant 0 : index
    %c0_17 = arith.constant 0 : index
    %19 = vector.load %arg8[%c0_16, %c0_17] : memref<1x128xf32, #tpu.memory_space<vmem>>, vector<1x128xf32>
    %20 = vector.broadcast %19 : vector<1x128xf32> to vector<8x128xf32>
    %21 = arith.addf %18, %20 : vector<8x128xf32>
    %22 = vector.extract_strided_slice %21 {offsets = [0, 0], sizes = [8, 2], strides = [1, 1]} : vector<8x128xf32> to vector<8x2xf32>
    %23 = tpu.iota {dimensions = array<i32: 1>} : vector<8x2xi32>
    %c0_i32 = arith.constant 0 : i32
    %24 = vector.broadcast %c0_i32 : i32 to vector<8x2xi32>
    %25 = arith.cmpi eq, %23, %24 : vector<8x2xi32>
    %cst_18 = arith.constant 5.000000e-01 : f32
    %26 = vector.broadcast %cst_18 : f32 to vector<8x2xf32>
    %27 = arith.mulf %26, %22 : vector<8x2xf32>
    %28 = arith.select %25, %27, %22 : vector<8x2xi1>, vector<8x2xf32>
    %29 = math.tanh %28 : vector<8x2xf32>
    %c0_i32_19 = arith.constant 0 : i32
    %30 = vector.broadcast %c0_i32_19 : i32 to vector<8x2xi32>
    %31 = arith.cmpi eq, %23, %30 : vector<8x2xi32>
    %cst_20 = arith.constant 1.000000e+00 : f32
    %32 = vector.broadcast %cst_20 : f32 to vector<8x2xf32>
    %33 = arith.addf %29, %32 : vector<8x2xf32>
    %cst_21 = arith.constant 5.000000e-01 : f32
    %34 = arith.mulf %cst_21, %0 : f32
    %35 = vector.broadcast %34 : f32 to vector<8x2xf32>
    %36 = arith.mulf %33, %35 : vector<8x2xf32>
    %c1_i32 = arith.constant 1 : i32
    %37 = vector.broadcast %c1_i32 : i32 to vector<8x2xi32>
    %38 = arith.cmpi eq, %23, %37 : vector<8x2xi32>
    %39 = vector.broadcast %1 : f32 to vector<8x2xf32>
    %40 = arith.mulf %29, %39 : vector<8x2xf32>
    %41 = arith.select %38, %40, %22 : vector<8x2xi1>, vector<8x2xf32>
    %42 = arith.select %31, %36, %41 : vector<8x2xi1>, vector<8x2xf32>
    %c0_22 = arith.constant 0 : index
    %c0_23 = arith.constant 0 : index
    %43 = vector.load %arg9[%c0_22, %c0_23] : memref<8x2xf32, #tpu.memory_space<vmem>>, vector<8x2xf32>
    tpu.vector_store %arg9[%c0_22, %c0_23], %42 {strides = array<i32>} : memref<8x2xf32, #tpu.memory_space<vmem>>, vector<8x2xf32>,
    return
  }
  func.func @transform_0(%arg0: i32) -> i32 {
    %c0_i32 = arith.constant 0 : i32
    %c0_i32_0 = arith.constant 0 : i32
    return %c0_i32 : i32
  }
  func.func @transform_1(%arg0: i32) -> (i32, i32) {
    %c0_i32 = arith.constant 0 : i32
    %c0_i32_0 = arith.constant 0 : i32
    return %arg0, %c0_i32 : i32, i32
  }
  func.func @transform_2(%arg0: i32) -> (i32, i32) {
    %c0_i32 = arith.constant 0 : i32
    %c0_i32_0 = arith.constant 0 : i32
    %c0_i32_1 = arith.constant 0 : i32
    return %c0_i32, %c0_i32_0 : i32, i32
  }
  func.func @transform_3(%arg0: i32) -> (i32, i32) {
    %c0_i32 = arith.constant 0 : i32
    %c0_i32_0 = arith.constant 0 : i32
    %c0_i32_1 = arith.constant 0 : i32
    return %c0_i32, %c0_i32_0 : i32, i32
  }
  func.func @transform_4(%arg0: i32) -> (i32, i32) {
    %c0_i32 = arith.constant 0 : i32
    %c0_i32_0 = arith.constant 0 : i32
    %c0_i32_1 = arith.constant 0 : i32
    return %c0_i32, %c0_i32_0 : i32, i32
  }
  func.func @transform_5(%arg0: i32) -> (i32, i32) {
    %c0_i32 = arith.constant 0 : i32
    %c0_i32_0 = arith.constant 0 : i32
    %c0_i32_1 = arith.constant 0 : i32
    return %c0_i32, %c0_i32_0 : i32, i32
  }
  func.func @transform_6(%arg0: i32) -> (i32, i32) {
    %c0_i32 = arith.constant 0 : i32
    %c0_i32_0 = arith.constant 0 : i32
    %c0_i32_1 = arith.constant 0 : i32
    return %c0_i32, %c0_i32_0 : i32, i32
  }
  func.func @transform_7(%arg0: i32) -> (i32, i32) {
    %c0_i32 = arith.constant 0 : i32
    %c0_i32_0 = arith.constant 0 : i32
    %c0_i32_1 = arith.constant 0 : i32
    return %c0_i32, %c0_i32_0 : i32, i32
  }
  func.func @transform_8(%arg0: i32) -> (i32, i32) {
    %c0_i32 = arith.constant 0 : i32
    %c0_i32_0 = arith.constant 0 : i32
    return %arg0, %c0_i32 : i32, i32
  }
}

</mosaic_0001>

<bundles_post_ra>
// kernel: actor_forward.1
= control target key start
LH: loop header
LB: loop body
LE: loop exit
PB: predicated region body
PF: predicated region fallthrough
CT: control target
= control target key end

     0   :  { %13 = vsyncpa [#allocation4], 0  ;;  %s817_s0 = inlined_call_operand.vmem [shape: f32[2], index: 0, kind: input, shape index: {}]   ;;  %s818_s1 = inlined_call_operand.vmem [shape: f32[8,16], index: 1, kind: input, shape index: {}]   ;;  %s819_s2 = inlined_call_operand.hbm [shape: f32[16,256], index: 2, kind: input, shape index: {}]   ;;  %s820_s3 = inlined_call_operand.vmem [shape: f32[1,256], index: 3, kind: input, shape index: {}]   ;;  %s821_s4 = inlined_call_operand.hbm [shape: f32[256,256], index: 4, kind: input, shape index: {}]   ;;  %s822_s5 = inlined_call_operand.vmem [shape: f32[1,256], index: 5, kind: input, shape index: {}]   ;;  %s823_s6 = inlined_call_operand.hbm [shape: f32[256,128], index: 6, kind: input, shape index: {}]   ;;  %s824_s7 = inlined_call_operand.vmem [shape: f32[1,128], index: 7, kind: input, shape index: {}]   ;;  %s825_s8 = inlined_call_operand.vmem [shape: f32[8,2], index: 8, kind: output, shape index: {}]  }
   0x1   :  { %14 = vsyncpa [#allocation3], 0 }
   0x2   :  { %15 = vsyncpa [#allocation7], 0  ;;  %s22_s29 = sshll.u32 %s817_s0, 4  ;;  %s694_s30 = smov [#allocation6]   ;;  %s23_s29 = int_to_ptr.vmem [resolvable:$true] %s22_s29 }
   0x3   :  { %s47_s9 = sshll.u32 %s694_s30, 4  ;;  %s610_s12 = scalar_lea.hbm %s821_s4, 8192  ;;  %s48_s9 = int_to_ptr.vmem [resolvable:$true] %s47_s9 }
   0x4   :  { %p611_p0 = scmp.ne.s32.totalorder %s821_s4, %s610_s12  ;;  %p614_p1 = scmp.lt.u32.totalorder %s610_s12, %s821_s4 }
   0x6   :  { %p616_p2 = pnand %p614_p1, %p611_p0 }
   0x8   :  { %619 = shalt.err (!%p616_p2)
}
   0x9   :  { %s620_s17 = scalar_lea.vmem %s48_s9, 8192  ;;  %p625_p4 = scmp.lt.s32.totalorder %s48_s9, %s48_s9 }
   0xa   :  { %p621_p3 = scmp.ne.s32.totalorder %s48_s9, %s620_s17  ;;  %p626_p5 = scmp.lt.s32.totalorder %s620_s17, %s620_s17 }
   0xc   :  { %p627_p6 = por %p626_p5, %p625_p4 }
   0xe   :  { %p628_p7 = pnand %p627_p6, %p621_p3 }
  0x10   :  { %631 = shalt.err (!%p628_p7)
}
  0x11   :  { %s695_s0 = smov 256   ;;  %s696_s18 = smov 16  }
  0x12   :  { %53 = dma.hbm_to_vmem [thread:$0]  %s821_s4, 8192, %s48_s9, [#allocation7], %s695_s0, %s695_s0, %s696_s18  }
  0x13   :  { %s632_s21 = scalar_lea.vmem %s23_s29, 16  ;;  %p637_p9 = scmp.lt.s32.totalorder %s23_s29, %s23_s29 }
  0x14   :  { %p633_p8 = scmp.ne.s32.totalorder %s23_s29, %s632_s21  ;;  %p638_p10 = scmp.lt.s32.totalorder %s632_s21, %s632_s21 }
  0x16   :  { %p639_p11 = por %p638_p10, %p637_p9 }
  0x18   :  { %p640_p12 = pnand %p639_p11, %p633_p8 }
  0x1a   :  { %643 = shalt.err (!%p640_p12)
}
  0x1b   :  { %s697_s22 = smov [#allocation2]   ;;  %s698_s23 = smov [#allocation5]  }
  0x1c   :  { %25 = dma.vmem_to_smem %s23_s29, 16, %s697_s22, [#allocation4]  }
  0x1d   :  { %s33_s24 = sshll.u32 %s698_s23, 4  ;;  %s699_s25 = smov [#allocation8]   ;;  %s34_s24 = int_to_ptr.vmem [resolvable:$true] %s33_s24 }
  0x1e   :  { %s61_s26 = sshll.u32 %s699_s25, 4  ;;  %s644_s4 = scalar_lea.hbm %s819_s2, 512  ;;  %s766_s26 = int_to_ptr.vmem [resolvable:$true] %s61_s26 }
  0x1f   :  { %p645_p13 = scmp.ne.s32.totalorder %s819_s2, %s644_s4  ;;  %p648_p0 = scmp.lt.u32.totalorder %s644_s4, %s819_s2 }
  0x21   :  { %p650_p1 = pnand %p648_p0, %p645_p13 }
  0x23   :  { %653 = shalt.err (!%p650_p1)
}
  0x24   :  { %s654_s29 = scalar_lea.vmem %s34_s24, 512  ;;  %p659_p3 = scmp.lt.s32.totalorder %s34_s24, %s34_s24 }
  0x25   :  { %p655_p2 = scmp.ne.s32.totalorder %s34_s24, %s654_s29  ;;  %p660_p4 = scmp.lt.s32.totalorder %s654_s29, %s654_s29 }
  0x27   :  { %p661_p5 = por %p660_p4, %p659_p3 }
  0x29   :  { %p662_p6 = pnand %p661_p5, %p655_p2 }
  0x2b   :  { %665 = shalt.err (!%p662_p6)
}
  0x2c   :  { %39 = dma.hbm_to_vmem [thread:$0]  %s819_s2, 512, %s34_s24, [#allocation3], %s695_s0, %s695_s0, %s696_s18  }
  0x2d   :  { %s666_s16 = scalar_lea.hbm %s823_s6, 4096 }
  0x2e   :  { %p667_p7 = scmp.ne.s32.totalorder %s823_s6, %s666_s16  ;;  %p670_p8 = scmp.lt.u32.totalorder %s666_s16, %s823_s6 }
  0x30   :  { %p672_p9 = pnand %p670_p8, %p667_p7 }
  0x32   :  { %675 = shalt.err (!%p672_p9)
}
  0x33   :  { %s676_s22 = scalar_lea.vmem %s766_s26, 4096  ;;  %p681_p11 = scmp.lt.s32.totalorder %s766_s26, %s766_s26 }
  0x34   :  { %p677_p10 = scmp.ne.s32.totalorder %s766_s26, %s676_s22  ;;  %p682_p12 = scmp.lt.s32.totalorder %s676_s22, %s676_s22 }
  0x36   :  { %p683_p13 = por %p682_p12, %p681_p11 }
  0x38   :  { %p684_p0 = pnand %p683_p13, %p677_p10 }
  0x3a   :  { %687 = shalt.err (!%p684_p0)
}
  0x3b   :  { %s700_s2 = smov 128   ;;  %s701_s0 = smov 8  }
  0x3c   :  { %67 = dma.hbm_to_vmem [thread:$0]  %s823_s6, 4096, %s766_s26, [#allocation7], %s700_s2, %s700_s2, %s701_s0  }
  0x3d   :  { %688 = dma.done.wait [#allocation4], 16  }
  0x3e   :  { %689 = vsyncadd [#allocation4], 4294967280 }
  0x3f   :  { %690 = dma.done.wait [#allocation3], 512  }
  0x40   :  { %691 = vsyncadd [#allocation3], 4294966784 }
  0x41   :  { %692 = dma.done.wait [#allocation7], 12288  }
  0x42   :  { %693 = vsyncadd [#allocation7], 4294955008 }
  0x43   :  { %82 = sfence }
  0x44   :  { %v87_v0 = vld [vmem:[#allocation5 + $0x8] sm:$0xff]  ;;  %v89_v1 = vld [vmem:[#allocation5 + $0x18] sm:$0xff]  ;;  %v86_v2 = vld [vmem:[#allocation5] sm:$0xff]  ;;  %v702_v5 = vmov 0.0   ;;  %vm102_vm0 = vcmask 130048   ;;  %s461_s4 = sld [smem:[#allocation2 + $0x1]] }
  0x45   :  { %v499_v3 = vpack.c.bf16 %v89_v1, %v87_v0  ;;  %v88_v4 = vld [vmem:[#allocation5 + $0x10] sm:$0xff]  ;;  %170 = vmatprep.mubr.f32.mxu0 %v702_v5  ;;  %v180_v6 = vld [vmem:[#allocation6 + $0x8] sm:$0xff]  ;;  %v85_v8 = vld [vmem:[%s818_s1] sm:$0xff]  ;;  %vm452_vm3 = vcmask 15360  }
  0x46   :  { %v501_v7 = vpack.c.bf16 %v88_v4, %v86_v2  ;;  %v182_v9 = vld [vmem:[#allocation6 + $0x18] sm:$0xff]  ;;  %v179_v10 = vld [vmem:[#allocation6] sm:$0xff]  ;;  %v181_v11 = vld [vmem:[#allocation6 + $0x10] sm:$0xff] }
  0x47   :  { %500 = vmatprep.subr.bf16.mxu0 %v499_v3  ;;  %v503_v12 = vpack.c.bf16 %v182_v9, %v180_v6  ;;  %v505_v13 = vpack.c.bf16 %v181_v11, %v179_v10  ;;  %v184_v14 = vld [vmem:[#allocation6 + $0x28] sm:$0xff]  ;;  %v186_v15 = vld [vmem:[#allocation6 + $0x38] sm:$0xff]  ;;  %v183_v16 = vld [vmem:[#allocation6 + $0x20] sm:$0xff] }
  0x48   :  { %502 = vmatpush1.bf16.msra.mxu0 %v501_v7  ;;  %v507_v17 = vpack.c.bf16 %v186_v15, %v184_v14  ;;  %v185_v18 = vld [vmem:[#allocation6 + $0x30] sm:$0xff]  ;;  %v188_v19 = vld [vmem:[#allocation6 + $0x48] sm:$0xff]  ;;  %v190_v20 = vld [vmem:[#allocation6 + $0x58] sm:$0xff] }
  0x49   :  { %504 = vmatprep.subr.bf16.mxu1 %v503_v12  ;;  %v509_v21 = vpack.c.bf16 %v185_v18, %v183_v16  ;;  %v511_v22 = vpack.c.bf16 %v190_v20, %v188_v19  ;;  %v187_v23 = vld [vmem:[#allocation6 + $0x40] sm:$0xff]  ;;  %v189_v24 = vld [vmem:[#allocation6 + $0x50] sm:$0xff]  ;;  %v192_v25 = vld [vmem:[#allocation6 + $0x68] sm:$0xff] }
  0x4a   :  { %506 = vmatpush1.bf16.msra.mxu1 %v505_v13  ;;  %v194_v26 = vld [vmem:[#allocation6 + $0x78] sm:$0xff]  ;;  %v513_v27 = vpack.c.bf16 %v189_v24, %v187_v23  ;;  %v191_v29 = vld [vmem:[#allocation6 + $0x60] sm:$0xff]  ;;  %v193_v30 = vld [vmem:[#allocation6 + $0x70] sm:$0xff] }
  0x4b   :  { %462 = vmatmul.mubr.msk.f32.vlgmr.msra.gmra.mrb[0].mxu0 %vm102_vm0, %v85_v8  ;;  %508 = vmatprep.subr.bf16.mxu1 %v507_v17  ;;  %v515_v28 = vpack.c.bf16 %v194_v26, %v192_v25  ;;  %v196_v31 = vld [vmem:[#allocation6 + $0x88] sm:$0xff]  ;;  %v198_v32 = vld [vmem:[#allocation6 + $0x98] sm:$0xff]  ;;  %v517_v33 = vpack.c.bf16 %v193_v30, %v191_v29  ;;  %v195_v35 = vld [vmem:[#allocation6 + $0x80] sm:$0xff] }
  0x4c   :  { %v519_v34 = vpack.c.bf16 %v198_v32, %v196_v31  ;;  %v197_v36 = vld [vmem:[#allocation6 + $0x90] sm:$0xff]  ;;  %v200_v37 = vld [vmem:[#allocation6 + $0xa8] sm:$0xff]  ;;  %v202_v38 = vld [vmem:[#allocation6 + $0xb8] sm:$0xff] }
  0x4d   :  { %v521_v39 = vpack.c.bf16 %v197_v36, %v195_v35  ;;  %v523_v40 = vpack.c.bf16 %v202_v38, %v200_v37  ;;  %v199_v41 = vld [vmem:[#allocation6 + $0xa0] sm:$0xff]  ;;  %v201_v42 = vld [vmem:[#allocation6 + $0xb0] sm:$0xff]  ;;  %v204_v43 = vld [vmem:[#allocation6 + $0xc8] sm:$0xff] }
  0x4e   :  { %510 = vmatpush1.bf16.msra.mxu1 %v509_v21  ;;  %v206_v44 = vld [vmem:[#allocation6 + $0xd8] sm:$0xff]  ;;  %v525_v45 = vpack.c.bf16 %v201_v42, %v199_v41  ;;  %v203_v47 = vld [vmem:[#allocation6 + $0xc0] sm:$0xff]  ;;  %v205_v48 = vld [vmem:[#allocation6 + $0xd0] sm:$0xff] }
  0x4f   :  { %512 = vmatprep.subr.bf16.mxu1 %v511_v22  ;;  %v527_v46 = vpack.c.bf16 %v206_v44, %v204_v43  ;;  %v208_v49 = vld [vmem:[#allocation6 + $0xe8] sm:$0xff]  ;;  %v210_v50 = vld [vmem:[#allocation6 + $0xf8] sm:$0xff]  ;;  %v529_v51 = vpack.c.bf16 %v205_v48, %v203_v47  ;;  %v207_v53 = vld [vmem:[#allocation6 + $0xe0] sm:$0xff] }
  0x50   :  { %v531_v52 = vpack.c.bf16 %v210_v50, %v208_v49  ;;  %v209_v54 = vld [vmem:[#allocation6 + $0xf0] sm:$0xff]  ;;  %v212_v55 = vld [vmem:[#allocation6 + $0x108] sm:$0xff]  ;;  %v214_v56 = vld [vmem:[#allocation6 + $0x118] sm:$0xff] }
  0x51   :  { %v533_v57 = vpack.c.bf16 %v209_v54, %v207_v53  ;;  %v535_v58 = vpack.c.bf16 %v214_v56, %v212_v55  ;;  %v211_v59 = vld [vmem:[#allocation6 + $0x100] sm:$0xff]  ;;  %v213_v60 = vld [vmem:[#allocation6 + $0x110] sm:$0xff]  ;;  %v216_v61 = vld [vmem:[#allocation6 + $0x128] sm:$0xff] }
  0x52   :  { %514 = vmatpush1.bf16.msra.mxu1 %v513_v27  ;;  %v218_v62 = vld [vmem:[#allocation6 + $0x138] sm:$0xff]  ;;  %v537_v63 = vpack.c.bf16 %v213_v60, %v211_v59  ;;  %v215_v1 = vld [vmem:[#allocation6 + $0x120] sm:$0xff]  ;;  %v217_v2 = vld [vmem:[#allocation6 + $0x130] sm:$0xff] }
  0x53   :  { %516 = vmatprep.subr.bf16.mxu1 %v515_v28  ;;  %v539_v0 = vpack.c.bf16 %v218_v62, %v216_v61  ;;  %v220_v3 = vld [vmem:[#allocation6 + $0x148] sm:$0xff]  ;;  %v222_v4 = vld [vmem:[#allocation6 + $0x158] sm:$0xff]  ;;  %v541_v5 = vpack.c.bf16 %v217_v2, %v215_v1  ;;  %v219_v7 = vld [vmem:[#allocation6 + $0x140] sm:$0xff] }
  0x54   :  { %v543_v6 = vpack.c.bf16 %v222_v4, %v220_v3  ;;  %v221_v8 = vld [vmem:[#allocation6 + $0x150] sm:$0xff]  ;;  %v224_v9 = vld [vmem:[#allocation6 + $0x168] sm:$0xff]  ;;  %v226_v10 = vld [vmem:[#allocation6 + $0x178] sm:$0xff] }
  0x55   :  { %v545_v11 = vpack.c.bf16 %v221_v8, %v219_v7  ;;  %v547_v12 = vpack.c.bf16 %v226_v10, %v224_v9  ;;  %v223_v13 = vld [vmem:[#allocation6 + $0x160] sm:$0xff]  ;;  %v225_v14 = vld [vmem:[#allocation6 + $0x170] sm:$0xff]  ;;  %v228_v15 = vld [vmem:[#allocation6 + $0x188] sm:$0xff] }
  0x56   :  { %518 = vmatpush1.bf16.msra.mxu1 %v517_v33  ;;  %v230_v16 = vld [vmem:[#allocation6 + $0x198] sm:$0xff]  ;;  %v549_v17 = vpack.c.bf16 %v225_v14, %v223_v13  ;;  %v227_v19 = vld [vmem:[#allocation6 + $0x180] sm:$0xff]  ;;  %v229_v20 = vld [vmem:[#allocation6 + $0x190] sm:$0xff] }
  0x57   :  { %520 = vmatprep.subr.bf16.mxu1 %v519_v34  ;;  %v551_v18 = vpack.c.bf16 %v230_v16, %v228_v15  ;;  %v232_v21 = vld [vmem:[#allocation6 + $0x1a8] sm:$0xff]  ;;  %v234_v22 = vld [vmem:[#allocation6 + $0x1b8] sm:$0xff]  ;;  %v553_v23 = vpack.c.bf16 %v229_v20, %v227_v19  ;;  %v231_v25 = vld [vmem:[#allocation6 + $0x1a0] sm:$0xff]  ;;  %v92_v15 = vlaneseq }
  0x58   :  { %v555_v24 = vpack.c.bf16 %v234_v22, %v232_v21  ;;  %v233_v26 = vld [vmem:[#allocation6 + $0x1b0] sm:$0xff]  ;;  %v236_v27 = vld [vmem:[#allocation6 + $0x1c8] sm:$0xff]  ;;  %v238_v28 = vld [vmem:[#allocation6 + $0x1d8] sm:$0xff] }
  0x59   :  { %v557_v29 = vpack.c.bf16 %v233_v26, %v231_v25  ;;  %v559_v30 = vpack.c.bf16 %v238_v28, %v236_v27  ;;  %v235_v31 = vld [vmem:[#allocation6 + $0x1c0] sm:$0xff]  ;;  %v237_v32 = vld [vmem:[#allocation6 + $0x1d0] sm:$0xff]  ;;  %v240_v34 = vld [vmem:[#allocation6 + $0x1e8] sm:$0xff]  ;;  %v93_v16 = vshrl.u32 %v92_v15, 7 }
  0x5a   :  { %522 = vmatpush1.bf16.msra.mxu1 %v521_v39  ;;  %v561_v33 = vpack.c.bf16 %v237_v32, %v235_v31  ;;  %v242_v35 = vld [vmem:[#allocation6 + $0x1f8] sm:$0xff]  ;;  %v239_v37 = vld [vmem:[#allocation6 + $0x1e0] sm:$0xff]  ;;  %v241_v38 = vld [vmem:[#allocation6 + $0x1f0] sm:$0xff] }
  0x5b   :  { %524 = vmatprep.subr.bf16.mxu1 %v523_v40  ;;  %v563_v36 = vpack.c.bf16 %v242_v35, %v240_v34  ;;  %v565_v39 = vpack.c.bf16 %v241_v38, %v239_v37  ;;  %v344_v40 = vld [vmem:[#allocation8 + $0x80] sm:$0xff]  ;;  %v345_v41 = vld [vmem:[#allocation8 + $0x88] sm:$0xff]  ;;  %v330_v49 = vld [vmem:[#allocation8 + $0x10] sm:$0xff]  ;;  %v98_v19 = vsub.s32 1, %v93_v16 }
  0x5c   :  { %v328_v42 = vld [vmem:[#allocation8] sm:$0xff]  ;;  %v567_v43 = vpack.c.bf16 %v345_v41, %v344_v40  ;;  %v329_v44 = vld [vmem:[#allocation8 + $0x8] sm:$0xff]  ;;  %v331_v50 = vld [vmem:[#allocation8 + $0x18] sm:$0xff] }
  0x5d   :  { %v569_v47 = vpack.c.bf16 %v329_v44, %v328_v42  ;;  %v573_v53 = vpack.c.bf16 %v331_v50, %v330_v49  ;;  %v332_v55 = vld [vmem:[#allocation8 + $0x20] sm:$0xff]  ;;  %v333_v56 = vld [vmem:[#allocation8 + $0x28] sm:$0xff]  ;;  %v334_v61 = vld [vmem:[#allocation8 + $0x30] sm:$0xff] }
  0x5e   :  { %526 = vmatpush1.bf16.msra.mxu1 %v525_v45  ;;  %v346_v45 = vld [vmem:[#allocation8 + $0x90] sm:$0xff]  ;;  %568 = vmatprep.subr.bf16.mxu0 %v567_v43  ;;  %v577_v59 = vpack.c.bf16 %v333_v56, %v332_v55  ;;  %v335_v62 = vld [vmem:[#allocation8 + $0x38] sm:$0xff]  ;;  %v336_v3 = vld [vmem:[#allocation8 + $0x40] sm:$0xff] }
  0x5f   :  { %528 = vmatprep.subr.bf16.mxu1 %v527_v46  ;;  %v347_v46 = vld [vmem:[#allocation8 + $0x98] sm:$0xff]  ;;  %570 = vmatpush3.bf16.msra.mxu0 %v569_v47  ;;  %v581_v1 = vpack.c.bf16 %v335_v62, %v334_v61  ;;  %v337_v4 = vld [vmem:[#allocation8 + $0x48] sm:$0xff]  ;;  %v338_v9 = vld [vmem:[#allocation8 + $0x50] sm:$0xff]  ;;  %v438_v47 = vand.u32 127, %v92_v15 }
  0x60   :  { %v571_v48 = vpack.c.bf16 %v347_v46, %v346_v45  ;;  %v585_v7 = vpack.c.bf16 %v337_v4, %v336_v3  ;;  %v339_v10 = vld [vmem:[#allocation8 + $0x58] sm:$0xff]  ;;  %v340_v28 = vld [vmem:[#allocation8 + $0x60] sm:$0xff]  ;;  %v358_v31 = vld [vmem:[#allocation8 + $0xf0] sm:$0xff] }
  0x61   :  { %v589_v13 = vpack.c.bf16 %v339_v10, %v338_v9  ;;  %v359_v32 = vld [vmem:[#allocation8 + $0xf8] sm:$0xff]  ;;  %v342_v34 = vld [vmem:[#allocation8 + $0x70] sm:$0xff]  ;;  %v243_v37 = vld [vmem:[%s822_s5] sm:$0x3]  ;;  %vm439_vm1 = vcmp.eq.s32.totalorder %v438_v47, 0  ;;  %s83_s5 = sld [smem:[#allocation2]] }
  0x62   :  { %530 = vmatpush1.bf16.msra.mxu1 %v529_v51  ;;  %v348_v51 = vld [vmem:[#allocation8 + $0xa0] sm:$0xff]  ;;  %572 = vmatprep.subr.bf16.mxu0 %v571_v48  ;;  %v343_v35 = vld [vmem:[#allocation8 + $0x78] sm:$0xff]  ;;  %vm447_vm2 = vcmp.eq.s32.totalorder %v438_v47, 1 }
  0x63   :  { %532 = vmatprep.subr.bf16.mxu1 %v531_v52  ;;  %v349_v52 = vld [vmem:[#allocation8 + $0xa8] sm:$0xff]  ;;  %574 = vmatpush3.bf16.msra.mxu0 %v573_v53  ;;  %v463_v48 = vld [vmem:[%s824_s7] ss:$0 sm:$0xff] }
  0x64   :  { %v575_v54 = vpack.c.bf16 %v349_v52, %v348_v51 }
  0x66   :  { %534 = vmatpush1.bf16.msra.mxu1 %v533_v57  ;;  %v350_v57 = vld [vmem:[#allocation8 + $0xb0] sm:$0xff]  ;;  %576 = vmatprep.subr.bf16.mxu0 %v575_v54  ;;  %v448_v54 = vstv %s461_s4 }
  0x67   :  { %536 = vmatprep.subr.bf16.mxu1 %v535_v58  ;;  %v351_v58 = vld [vmem:[#allocation8 + $0xb8] sm:$0xff]  ;;  %578 = vmatpush3.bf16.msra.mxu0 %v577_v59  ;;  %s444_s30 = smul.f32 0.5, %s83_s5 }
  0x68   :  { %v579_v60 = vpack.c.bf16 %v351_v58, %v350_v57 }
  0x69   :  { %v445_v56 = vstv %s444_s30 }
  0x6a   :  { %538 = vmatpush1.bf16.msra.mxu1 %v537_v63  ;;  %v352_v63 = vld [vmem:[#allocation8 + $0xc0] sm:$0xff]  ;;  %580 = vmatprep.subr.bf16.mxu0 %v579_v60 }
  0x6b   :  { %540 = vmatprep.subr.bf16.mxu1 %v539_v0  ;;  %v353_v0 = vld [vmem:[#allocation8 + $0xc8] sm:$0xff]  ;;  %582 = vmatpush3.bf16.msra.mxu0 %v581_v1 }
  0x6c   :  { %v583_v2 = vpack.c.bf16 %v353_v0, %v352_v63 }
  0x6e   :  { %542 = vmatpush1.bf16.msra.mxu1 %v541_v5  ;;  %v354_v5 = vld [vmem:[#allocation8 + $0xd0] sm:$0xff]  ;;  %584 = vmatprep.subr.bf16.mxu0 %v583_v2 }
  0x6f   :  { %544 = vmatprep.subr.bf16.mxu1 %v543_v6  ;;  %v355_v6 = vld [vmem:[#allocation8 + $0xd8] sm:$0xff]  ;;  %586 = vmatpush3.bf16.msra.mxu0 %v585_v7 }
  0x70   :  { %v587_v8 = vpack.c.bf16 %v355_v6, %v354_v5 }
  0x72   :  { %546 = vmatpush1.bf16.msra.mxu1 %v545_v11  ;;  %v356_v11 = vld [vmem:[#allocation8 + $0xe0] sm:$0xff]  ;;  %588 = vmatprep.subr.bf16.mxu0 %v587_v8 }
  0x73   :  { %548 = vmatprep.subr.bf16.mxu1 %v547_v12  ;;  %v357_v12 = vld [vmem:[#allocation8 + $0xe8] sm:$0xff]  ;;  %590 = vmatpush3.bf16.msra.mxu0 %v589_v13 }
  0x74   :  { %v591_v14 = vpack.c.bf16 %v357_v12, %v356_v11 }
  0x76   :  { %550 = vmatpush1.bf16.msra.mxu1 %v549_v17  ;;  %592 = vmatprep.subr.bf16.mxu0 %v591_v14  ;;  %v94_v17 = vsub.s32 0, %v93_v16 }
  0x77   :  { %552 = vmatprep.subr.bf16.mxu1 %v551_v18  ;;  %v90_v18 = vld [vmem:[%s820_s3] sm:$0x3] }
  0x78   :  { %v95_v20 = vrot.slane %v90_v18, %v94_v17  ;;  %v99_v21 = vrot.slane %v90_v18, %v98_v19  ;;  %v248_v38 = vrot.slane %v243_v37, %v94_v17 }
  0x7a   :  { %554 = vmatpush1.bf16.msra.mxu1 %v553_v23 }
  0x7b   :  { %556 = vmatprep.subr.bf16.mxu1 %v555_v24 }
  0x7e   :  { %558 = vmatpush1.bf16.msra.mxu1 %v557_v29  ;;  %v341_v29 = vld [vmem:[#allocation8 + $0x68] sm:$0xff] }
  0x7f   :  { %560 = vmatprep.subr.bf16.mxu1 %v559_v30  ;;  %v593_v30 = vpack.c.bf16 %v341_v29, %v340_v28 }
  0x81   :  { %594 = vmatpush3.bf16.msra.mxu0 %v593_v30 }
  0x82   :  { %562 = vmatpush1.bf16.msra.mxu1 %v561_v33  ;;  %v595_v33 = vpack.c.bf16 %v359_v32, %v358_v31 }
  0x83   :  { %564 = vmatprep.subr.bf16.mxu1 %v563_v36  ;;  %v597_v36 = vpack.c.bf16 %v343_v35, %v342_v34 }
  0x84   :  { %596 = vmatprep.subr.bf16.mxu0 %v595_v33 }
  0x85   :  { %598 = vmatpush3.bf16.msra.mxu0 %v597_v36 }
  0x86   :  { %566 = vmatpush1.bf16.msra.mxu1 %v565_v39  ;;  %v252_v39 = vrot.slane %v243_v37, %v98_v19 }
 0x11e   :  { %v172_v22 = vpop.f32.mrb[0].mxu0 }
 0x11f   :  { %v173_v23 = vadd.f32 %v172_v22, %v95_v20  ;;  %v174_v24 = vpop.f32.mrb[1].mxu0 }
 0x120   :  { %v175_v25 = vadd.f32 %v174_v24, %v99_v21 }
 0x121   :  { %v177_v27 = vmax.f32 %v173_v23, 0.0 }
 0x122   :  { %v178_v26 = vmax.f32 %v175_v25, 0.0 }
 0x124   :  { %319 = vmatprep.mubr.f32.mxu1 %v178_v26 }
 0x125   :  { %320 = vmatmul.mubr.f32.vlgmr.msra.gmra.mrb[0].mxu1 %v177_v27 }
 0x1f8   :  { %v321_v40 = vpop.f32.mrb[0].mxu1 }
 0x1f9   :  { %v322_v41 = vadd.f32 %v321_v40, %v248_v38  ;;  %v323_v42 = vpop.f32.mrb[1].mxu1 }
 0x1fa   :  { %v324_v43 = vadd.f32 %v323_v42, %v252_v39 }
 0x1fb   :  { %v326_v45 = vmax.f32 %v322_v41, 0.0 }
 0x1fc   :  { %v327_v44 = vmax.f32 %v324_v43, 0.0 }
 0x1fe   :  { %431 = vmatprep.mubr.f32.mxu0 %v327_v44 }
 0x1ff   :  { %432 = vmatmul.mubr.f32.vlgmr.msra.gmra.mrb[2].mxu0 %v326_v45 }
 0x2d2   :  { %v496_v46 = vpop.f32.mrb[2].mxu0 }
 0x2d3   :  { %v497_v49 = vpop.f32.mrb[3].mxu0 }
 0x2d4   :  { %v498_v50 = vadd.f32 %v497_v49, %v496_v46 }
 0x2d6   :  { %v434_v51 = vadd.f32 %v498_v50, %v463_v48 }
 0x2d8   :  { %v440_v52 = vmul.f32 0.5, %v434_v51 }
 0x2da   :  { %v441_v53 = vsel %vm439_vm1, %v440_v52, %v434_v51 }
 0x2db   :  { %608 = vtanh.f32 %v441_v53 }
 0x2e5   :  { %v609_v55 = vpop.eup %608 }
 0x2e6   :  { %v443_v57 = vadd.f32 1.0, %v609_v55  ;;  %v449_v58 = vmul.f32 %v609_v55, %v448_v54 }
 0x2e8   :  { %v446_v59 = vmul.f32 %v445_v56, %v443_v57  ;;  %v450_v60 = vsel %vm447_vm2, %v449_v58, %v434_v51 }
 0x2ea   :  { %v451_v61 = vsel %vm439_vm1, %v446_v59, %v450_v60 }
 0x2eb   :  { %453 = vst.msk [vmem:[%s825_s8] sm:$0xff] %vm452_vm3, %v451_v61 }
 0x2ec   :  { %458 = vsyncpa [#allocation3], 1 }
 0x2ed   :  { %459 = vsyncpa [#allocation7], 1 }
 0x2ee   :  { %460 = vsyncpa [#allocation4], 1 }

</bundles_post_ra>
